<compile_context>
chip_gen: v6e
topology: v6e:2x2x1
jax: 0.10.0
libtpu: 0.0.40
codegen_flags: <defaults>
</compile_context>

<pallas_src>
import functools

import jax
import jax.numpy as jnp
from jax.experimental import pallas as pl
from jax.experimental.pallas import tpu as pltpu


# --------------------------------------------------------------------------
# Fused kernel: stacked FuzzyMapping MLP + parent_child_pair_loss
#   inputs  : parent/child/neg CLS blocks (B, D) + MLP params + partition w
#   output  : (3,) SMEM = [total_loss, possibility_loss, asym_poss_loss]
# --------------------------------------------------------------------------
def _fused_forward_kernel(parent_ref, child_ref, neg_ref,
                          w1_ref, b1_ref, w2_ref, b2_ref, wo_ref, bo_ref,
                          pw_ref, loss_ref, *, batch, gamma, margin, alpha,
                          use_volume_weights, regularize_volume, score_type):
    B = batch

    # Stack the three CLS blocks in VMEM (sublane-aligned concat, no HBM
    # round-trip) so the FuzzyMapping MLP runs as ONE MXU chain with M = 3B
    # and the weights are read exactly once.
    x = jnp.concatenate(
        [parent_ref[...], child_ref[...], neg_ref[...]], axis=0)      # (3B, D)

    # ---- FuzzyMapping: MLP(+ReLU) x2 -> Linear -> sigmoid (entity_regularizer)
    # TODO(synk): exact FuzzyMapping architecture / regularizer_type are
    # config-dependent in the original repo; this realization is used here.
    h = jnp.dot(x, w1_ref[...],
                preferred_element_type=jnp.float32) + b1_ref[...]
    h = jnp.maximum(h, 0.0)
    h = jnp.dot(h, w2_ref[...],
                preferred_element_type=jnp.float32) + b2_ref[...]
    h = jnp.maximum(h, 0.0)
    fs = jax.nn.sigmoid(
        jnp.dot(h, wo_ref[...], preferred_element_type=jnp.float32)
        + bo_ref[...])                                                 # (3B, P)

    # Static, sublane-aligned slices (B is a multiple of 8 here; for ragged B
    # use the (3, B, P) leading-axis layout described in the header).
    parent = fs[0 * B:1 * B, :]
    child = fs[1 * B:2 * B, :]
    neg = fs[2 * B:3 * B, :]

    # Partition weights (partition_regularizer = sigmoid), computed once.
    pw = pw_ref[...]                                                   # (1, P)
    if use_volume_weights:
        w = jax.nn.sigmoid(pw) if regularize_volume else pw
    else:
        w = jnp.ones_like(pw)

    if score_type == "possibility":
        # cal_pair_fuzzy_possibility / cal_single_fuzzy_possibility
        child_w = child * w                                            # reused
        pos_pair = jnp.sum(child_w * parent, axis=-1, keepdims=True)  # (B,1)
        child_p = jnp.sum(child_w, axis=-1, keepdims=True)            # (B,1)
        neg_pair = jnp.sum(child_w * neg, axis=-1, keepdims=True)     # (B,1)
    else:
        # cal_pair_weighted_cosine_possibility /
        # cal_single_weighted_cosine_possibility.  Faithful to the reference,
        # the partition weight hits BOTH operands of a pair score (effective
        # w^2) but only once in the single-set score.
        def _norm(v):
            return v * jax.lax.rsqrt(
                jnp.sum(v * v, axis=-1, keepdims=True) + 1e-12)
        cn, pn, nn_ = _norm(child), _norm(parent), _norm(neg)
        cw = cn * w
        pos_pair = jnp.sum(cw * (pn * w), axis=-1, keepdims=True)
        child_p = jnp.sum(cn * w, axis=-1, keepdims=True)
        neg_pair = jnp.sum(cw * (nn_ * w), axis=-1, keepdims=True)

    # parent_child_possibility_loss:
    #   mean(-logsigmoid(gamma * (pos - margin - neg)))
    # -logsigmoid(z) = softplus(-z), computed stably with exp/log only.
    z = gamma * (pos_pair - margin - neg_pair)
    neg_log_sig = jnp.maximum(-z, 0.0) + jnp.log(1.0 + jnp.exp(-jnp.abs(z)))

    # Asymmetry losses.  One exact reciprocal (EUP) replaces two divides and
    # matches the PyTorch division (no eps: child_p > 0 by construction).
    inv_child = pl.reciprocal(child_p, approx=False)
    cond_p = pos_pair * inv_child
    cond_n = neg_pair * inv_child

    # Final scalar reductions.  (A lane-packed (B, 3) single reduce was
    # considered; at these shapes the width-1 lane-concat relayout costs more
    # than the two extra 8-row sublane reduces it would save, so three plain
    # means are kept.  With the production batch grid these become per-tile
    # partial sums accumulated in scratch instead.)
    possibility_loss = jnp.mean(neg_log_sig)
    asym_loss = jnp.mean(jnp.square(cond_p - 1.0)) + jnp.mean(jnp.square(cond_n))

    # Scalar stores into the SMEM output (scalar slot; no lane-masked vst).
    loss_ref[0] = possibility_loss + alpha * asym_loss
    loss_ref[1] = possibility_loss
    loss_ref[2] = asym_loss


# --------------------------------------------------------------------------
# Wrapper reproducing SimpleFuzzySet.forward (post-BERT portion)
# --------------------------------------------------------------------------
def simple_fuzzyset_forward(cls_parent, cls_child, cls_neg, params,
                            partition_weights, hp):
    # dropout in eval mode -> identity.
    B, _ = cls_parent.shape

    kernel = functools.partial(
        _fused_forward_kernel,
        batch=B,
        gamma=hp["gamma_coeff"],
        margin=hp["margin"],
        alpha=hp["strength_alpha"],
        use_volume_weights=hp["use_volume_weights"],
        regularize_volume=hp["regularize_volume"],
        score_type=hp["score_type"],
    )

    losses = pl.pallas_call(
        kernel,
        out_shape=jax.ShapeDtypeStruct((3,), jnp.float32),
        in_specs=[pl.BlockSpec(memory_space=pltpu.MemorySpace.VMEM)] * 10,
        out_specs=pl.BlockSpec(memory_space=pltpu.MemorySpace.SMEM),
    )(cls_parent, cls_child, cls_neg,
      params["w1"], params["b1"], params["w2"], params["b2"],
      params["wo"], params["bo"], partition_weights)

    return losses[0], losses[1], losses[2]


if __name__ == "__main__":
    B, D, H, P = 8, 32, 32, 16  # batch, entity_dim, hidden_dim, n_partitions

    key = jax.random.PRNGKey(0)
    ks = jax.random.split(key, 9)

    # TODO(synk): self.pre_train_model (BERT) has no Pallas equivalent; its
    # [CLS] outputs are synthesized here as the kernel inputs.
    cls_parent = jax.random.normal(ks[0], (B, D), jnp.float32)
    cls_child = jax.random.normal(ks[1], (B, D), jnp.float32)
    cls_neg = jax.random.normal(ks[2], (B, D), jnp.float32)

    # Deterministic FuzzyMapping parameters.
    scale = 0.1
    params = {
        "w1": scale * jax.random.normal(ks[3], (D, H), jnp.float32),
        "b1": jnp.zeros((1, H), jnp.float32),
        "w2": scale * jax.random.normal(ks[4], (H, H), jnp.float32),
        "b2": jnp.zeros((1, H), jnp.float32),
        "wo": scale * jax.random.normal(ks[5], (H, P), jnp.float32),
        "bo": jnp.zeros((1, P), jnp.float32),
    }

    # nn.Parameter(torch.ones((n_partitions,))) carried as (1, P)
    partition_weights = jnp.ones((1, P), jnp.float32)

    hp = dict(gamma_coeff=1.0, margin=0.1, strength_alpha=0.5,
              use_volume_weights=True, regularize_volume=True,
              score_type="possibility")

    total, poss, asym = simple_fuzzyset_forward(
        cls_parent, cls_child, cls_neg, params, partition_weights, hp)
    jax.block_until_ready((total, poss, asym))
    print("KERNEL_OK")
</pallas_src>

<mosaic_0001>
module attributes {stable_mosaic.version = 11 : i64} {
  func.func @_fused_forward_kernel(%arg0: memref<8x32xf32, #tpu.memory_space<vmem>>, %arg1: memref<8x32xf32, #tpu.memory_space<vmem>>, %arg2: memref<8x32xf32, #tpu.memory_space<vmem>>, %arg3: memref<32x32xf32, #tpu.memory_space<vmem>>, %arg4: memref<1x32xf32, #tpu.memory_space<vmem>>, %arg5: memref<32x32xf32, #tpu.memory_space<vmem>>, %arg6: memref<1x32xf32, #tpu.memory_space<vmem>>, %arg7: memref<32x16xf32, #tpu.memory_space<vmem>>, %arg8: memref<1x16xf32, #tpu.memory_space<vmem>>, %arg9: memref<1x16xf32, #tpu.memory_space<vmem>>, %arg10: memref<3xf32, #tpu.memory_space<smem>>) attributes {dimension_semantics = [], scalar_prefetch = 0 : i64, scratch_operands = 0 : i64, tpu.core_type = #tpu.core_type<tc>} {
    %c0 = arith.constant 0 : index
    %c0_0 = arith.constant 0 : index
    %0 = vector.load %arg0[%c0, %c0_0] : memref<8x32xf32, #tpu.memory_space<vmem>>, vector<8x32xf32>
    %c0_1 = arith.constant 0 : index
    %c0_2 = arith.constant 0 : index
    %1 = vector.load %arg1[%c0_1, %c0_2] : memref<8x32xf32, #tpu.memory_space<vmem>>, vector<8x32xf32>
    %c0_3 = arith.constant 0 : index
    %c0_4 = arith.constant 0 : index
    %2 = vector.load %arg2[%c0_3, %c0_4] : memref<8x32xf32, #tpu.memory_space<vmem>>, vector<8x32xf32>
    %3 = tpu.concatenate %0, %1, %2 in 0 : vector<8x32xf32>, vector<8x32xf32>, vector<8x32xf32> -> vector<24x32xf32>
    %c0_5 = arith.constant 0 : index
    %c0_6 = arith.constant 0 : index
    %4 = vector.load %arg3[%c0_5, %c0_6] : memref<32x32xf32, #tpu.memory_space<vmem>>, vector<32x32xf32>
    %cst = arith.constant dense<0.000000e+00> : vector<24x32xf32>
    %5 = tpu.matmul %3, %4, %cst {dimension_numbers = #tpu.dot_dimension_numbers<[1], [0], [0], [1], [0, 0, 1, 1], [], []>} : vector<24x32xf32>, vector<32x32xf32>, vector<24x32xf32> -> vector<24x32xf32>
    %c0_7 = arith.constant 0 : index
    %c0_8 = arith.constant 0 : index
    %6 = vector.load %arg4[%c0_7, %c0_8] : memref<1x32xf32, #tpu.memory_space<vmem>>, vector<1x32xf32>
    %7 = vector.broadcast %6 : vector<1x32xf32> to vector<24x32xf32>
    %8 = arith.addf %5, %7 : vector<24x32xf32>
    %cst_9 = arith.constant 0.000000e+00 : f32
    %9 = vector.broadcast %cst_9 : f32 to vector<24x32xf32>
    %10 = arith.maximumf %8, %9 : vector<24x32xf32>
    %c0_10 = arith.constant 0 : index
    %c0_11 = arith.constant 0 : index
    %11 = vector.load %arg5[%c0_10, %c0_11] : memref<32x32xf32, #tpu.memory_space<vmem>>, vector<32x32xf32>
    %cst_12 = arith.constant dense<0.000000e+00> : vector<24x32xf32>
    %12 = tpu.matmul %10, %11, %cst_12 {dimension_numbers = #tpu.dot_dimension_numbers<[1], [0], [0], [1], [0, 0, 1, 1], [], []>} : vector<24x32xf32>, vector<32x32xf32>, vector<24x32xf32> -> vector<24x32xf32>
    %c0_13 = arith.constant 0 : index
    %c0_14 = arith.constant 0 : index
    %13 = vector.load %arg6[%c0_13, %c0_14] : memref<1x32xf32, #tpu.memory_space<vmem>>, vector<1x32xf32>
    %14 = vector.broadcast %13 : vector<1x32xf32> to vector<24x32xf32>
    %15 = arith.addf %12, %14 : vector<24x32xf32>
    %cst_15 = arith.constant 0.000000e+00 : f32
    %16 = vector.broadcast %cst_15 : f32 to vector<24x32xf32>
    %17 = arith.maximumf %15, %16 : vector<24x32xf32>
    %c0_16 = arith.constant 0 : index
    %c0_17 = arith.constant 0 : index
    %18 = vector.load %arg7[%c0_16, %c0_17] : memref<32x16xf32, #tpu.memory_space<vmem>>, vector<32x16xf32>
    %cst_18 = arith.constant dense<0.000000e+00> : vector<24x16xf32>
    %19 = tpu.matmul %17, %18, %cst_18 {dimension_numbers = #tpu.dot_dimension_numbers<[1], [0], [0], [1], [0, 0, 1, 1], [], []>} : vector<24x32xf32>, vector<32x16xf32>, vector<24x16xf32> -> vector<24x16xf32>
    %c0_19 = arith.constant 0 : index
    %c0_20 = arith.constant 0 : index
    %20 = vector.load %arg8[%c0_19, %c0_20] : memref<1x16xf32, #tpu.memory_space<vmem>>, vector<1x16xf32>
    %21 = vector.broadcast %20 : vector<1x16xf32> to vector<24x16xf32>
    %22 = arith.addf %19, %21 : vector<24x16xf32>
    %23 = arith.negf %22 : vector<24x16xf32>
    %24 = math.exp %23 : vector<24x16xf32>
    %cst_21 = arith.constant 1.000000e+00 : f32
    %25 = vector.broadcast %cst_21 : f32 to vector<24x16xf32>
    %26 = arith.addf %25, %24 : vector<24x16xf32>
    %27 = arith.divf %25, %26 : vector<24x16xf32>
    %28 = vector.extract_strided_slice %27 {offsets = [0, 0], sizes = [8, 16], strides = [1, 1]} : vector<24x16xf32> to vector<8x16xf32>
    %29 = vector.extract_strided_slice %27 {offsets = [8, 0], sizes = [8, 16], strides = [1, 1]} : vector<24x16xf32> to vector<8x16xf32>
    %30 = vector.extract_strided_slice %27 {offsets = [16, 0], sizes = [8, 16], strides = [1, 1]} : vector<24x16xf32> to vector<8x16xf32>
    %c0_22 = arith.constant 0 : index
    %c0_23 = arith.constant 0 : index
    %31 = vector.load %arg9[%c0_22, %c0_23] : memref<1x16xf32, #tpu.memory_space<vmem>>, vector<1x16xf32>
    %32 = arith.negf %31 : vector<1x16xf32>
    %33 = math.exp %32 : vector<1x16xf32>
    %cst_24 = arith.constant 1.000000e+00 : f32
    %34 = vector.broadcast %cst_24 : f32 to vector<1x16xf32>
    %35 = arith.addf %34, %33 : vector<1x16xf32>
    %36 = arith.divf %34, %35 : vector<1x16xf32>
    %37 = vector.broadcast %36 : vector<1x16xf32> to vector<8x16xf32>
    %38 = arith.mulf %29, %37 : vector<8x16xf32>
    %39 = arith.mulf %38, %28 : vector<8x16xf32>
    %cst_25 = arith.constant dense<0.000000e+00> : vector<8xf32>
    %40 = vector.multi_reduction <add>, %39, %cst_25 [1] : vector<8x16xf32> to vector<8xf32>
    %41 = vector.shape_cast %40 : vector<8xf32> to vector<8x1xf32>
    %cst_26 = arith.constant dense<0.000000e+00> : vector<8xf32>
    %42 = vector.multi_reduction <add>, %38, %cst_26 [1] : vector<8x16xf32> to vector<8xf32>
    %43 = vector.shape_cast %42 : vector<8xf32> to vector<8x1xf32>
    %44 = arith.mulf %38, %30 : vector<8x16xf32>
    %cst_27 = arith.constant dense<0.000000e+00> : vector<8xf32>
    %45 = vector.multi_reduction <add>, %44, %cst_27 [1] : vector<8x16xf32> to vector<8xf32>
    %46 = vector.shape_cast %45 : vector<8xf32> to vector<8x1xf32>
    %cst_28 = arith.constant 1.000000e-01 : f32
    %47 = vector.broadcast %cst_28 : f32 to vector<8x1xf32>
    %48 = arith.subf %41, %47 : vector<8x1xf32>
    %49 = arith.subf %48, %46 : vector<8x1xf32>
    %cst_29 = arith.constant 1.000000e+00 : f32
    %50 = vector.broadcast %cst_29 : f32 to vector<8x1xf32>
    %51 = arith.mulf %50, %49 : vector<8x1xf32>
    %cst_30 = arith.constant 0.000000e+00 : f32
    %52 = vector.broadcast %cst_30 : f32 to vector<8x1xf32>
    %53 = arith.subf %52, %51 : vector<8x1xf32>
    %cst_31 = arith.constant 0.000000e+00 : f32
    %54 = vector.broadcast %cst_31 : f32 to vector<8x1xf32>
    %55 = arith.maximumf %53, %54 : vector<8x1xf32>
    %56 = math.absf %51 : vector<8x1xf32>
    %cst_32 = arith.constant 0.000000e+00 : f32
    %57 = vector.broadcast %cst_32 : f32 to vector<8x1xf32>
    %58 = arith.subf %57, %56 : vector<8x1xf32>
    %59 = math.exp %58 : vector<8x1xf32>
    %cst_33 = arith.constant 1.000000e+00 : f32
    %60 = vector.broadcast %cst_33 : f32 to vector<8x1xf32>
    %61 = arith.addf %60, %59 : vector<8x1xf32>
    %62 = math.log %61 : vector<8x1xf32>
    %63 = arith.addf %55, %62 : vector<8x1xf32>
    %64 = tpu.reciprocal %43 : vector<8x1xf32> -> vector<8x1xf32>
    %65 = arith.mulf %41, %64 : vector<8x1xf32>
    %66 = arith.mulf %46, %64 : vector<8x1xf32>
    %67 = vector.shape_cast %63 : vector<8x1xf32> to vector<1x8x1xf32>
    %cst_34 = arith.constant dense<0.000000e+00> : vector<1xf32>
    %68 = vector.multi_reduction <add>, %67, %cst_34 [1, 2] : vector<1x8x1xf32> to vector<1xf32>
    %69 = vector.shape_cast %68 : vector<1xf32> to vector<1x1x1xf32>
    %70 = vector.extract %69[0, 0, 0] : f32 from vector<1x1x1xf32>
    %cst_35 = arith.constant 8.000000e+00 : f32
    %71 = arith.divf %70, %cst_35 : f32
    %cst_36 = arith.constant 1.000000e+00 : f32
    %72 = vector.broadcast %cst_36 : f32 to vector<8x1xf32>
    %73 = arith.subf %65, %72 : vector<8x1xf32>
    %74 = arith.mulf %73, %73 : vector<8x1xf32>
    %75 = vector.shape_cast %74 : vector<8x1xf32> to vector<1x8x1xf32>
    %cst_37 = arith.constant dense<0.000000e+00> : vector<1xf32>
    %76 = vector.multi_reduction <add>, %75, %cst_37 [1, 2] : vector<1x8x1xf32> to vector<1xf32>
    %77 = vector.shape_cast %76 : vector<1xf32> to vector<1x1x1xf32>
    %78 = vector.extract %77[0, 0, 0] : f32 from vector<1x1x1xf32>
    %cst_38 = arith.constant 8.000000e+00 : f32
    %79 = arith.divf %78, %cst_38 : f32
    %80 = arith.mulf %66, %66 : vector<8x1xf32>
    %81 = vector.shape_cast %80 : vector<8x1xf32> to vector<1x8x1xf32>
    %cst_39 = arith.constant dense<0.000000e+00> : vector<1xf32>
    %82 = vector.multi_reduction <add>, %81, %cst_39 [1, 2] : vector<1x8x1xf32> to vector<1xf32>
    %83 = vector.shape_cast %82 : vector<1xf32> to vector<1x1x1xf32>
    %84 = vector.extract %83[0, 0, 0] : f32 from vector<1x1x1xf32>
    %cst_40 = arith.constant 8.000000e+00 : f32
    %85 = arith.divf %84, %cst_40 : f32
    %86 = arith.addf %79, %85 : f32
    %cst_41 = arith.constant 5.000000e-01 : f32
    %87 = arith.mulf %cst_41, %86 : f32
    %88 = arith.addf %71, %87 : f32
    %c0_42 = arith.constant 0 : index
    %89 = memref.load %arg10[%c0_42] : memref<3xf32, #tpu.memory_space<smem>>
    memref.store %88, %arg10[%c0_42] : memref<3xf32, #tpu.memory_space<smem>>
    %c1 = arith.constant 1 : index
    %90 = memref.load %arg10[%c1] : memref<3xf32, #tpu.memory_space<smem>>
    memref.store %71, %arg10[%c1] : memref<3xf32, #tpu.memory_space<smem>>
    %c2 = arith.constant 2 : index
    %91 = memref.load %arg10[%c2] : memref<3xf32, #tpu.memory_space<smem>>
    memref.store %86, %arg10[%c2] : memref<3xf32, #tpu.memory_space<smem>>
    return
  }
}

</mosaic_0001>

<bundles_post_ra>
// kernel: tpu_custom_call.1
= control target key start
LH: loop header
LB: loop body
LE: loop exit
PB: predicated region body
PF: predicated region fallthrough
CT: control target
= control target key end

     0   :  { %15 = vsyncpa [#allocation3], 0  ;;  %s841_s0 = inlined_call_operand.vmem [shape: f32[8,32], index: 0, kind: input, shape index: {}]   ;;  %s842_s1 = inlined_call_operand.vmem [shape: f32[8,32], index: 1, kind: input, shape index: {}]   ;;  %s843_s2 = inlined_call_operand.hbm [shape: f32[8,32], index: 2, kind: input, shape index: {}]   ;;  %s844_s3 = inlined_call_operand.vmem [shape: f32[32,32], index: 3, kind: input, shape index: {}]   ;;  %s845_s4 = inlined_call_operand.vmem [shape: f32[1,32], index: 4, kind: input, shape index: {}]   ;;  %s846_s5 = inlined_call_operand.hbm [shape: f32[32,32], index: 5, kind: input, shape index: {}]   ;;  %s847_s6 = inlined_call_operand.vmem [shape: f32[1,32], index: 6, kind: input, shape index: {}]   ;;  %s848_s7 = inlined_call_operand.vmem [shape: f32[32,16], index: 7, kind: input, shape index: {}]   ;;  %s849_s8 = inlined_call_operand.vmem [shape: f32[1,16], index: 8, kind: input, shape index: {}]   ;;  %s850_s9 = inlined_call_operand.vmem [shape: f32[1,16], index: 9, kind: input, shape index: {}]   ;;  %s851_s10 = inlined_call_operand.hbm [shape: f32[3], index: 10, kind: output, shape index: {}]  }
   0x1   :  { %16 = vsyncpa [#allocation6], 0 }
   0x2   :  { %17 = vsyncpa [#allocation4], 0  ;;  %s685_s13 = smov [#allocation2]   ;;  %s686_s15 = smov [#allocation5]  }
   0x3   :  { %s28_s14 = sshll.u32 %s685_s13, 4  ;;  %s41_s16 = sshll.u32 %s686_s15, 4  ;;  %s29_s14 = int_to_ptr.vmem [resolvable:$true] %s28_s14  ;;  %s42_s16 = int_to_ptr.vmem [resolvable:$true] %s41_s16 }
   0x4   :  { %s639_s17 = scalar_lea.vmem %s29_s14, 128  ;;  %p644_p1 = scmp.lt.s32.totalorder %s29_s14, %s29_s14 }
   0x5   :  { %p640_p0 = scmp.ne.s32.totalorder %s29_s14, %s639_s17  ;;  %p645_p2 = scmp.lt.s32.totalorder %s639_s17, %s639_s17 }
   0x7   :  { %p646_p3 = por %p645_p2, %p644_p1 }
   0x9   :  { %p647_p4 = pnand %p646_p3, %p640_p0 }
   0xb   :  { %650 = shalt.err (!%p647_p4)
}
   0xc   :  { %31 = dma.hbm_to_vmem [thread:$0]  %s843_s2, 128, %s29_s14, [#allocation3]  }
   0xd   :  { %s659_s20 = scalar_lea.vmem %s42_s16, 512  ;;  %p664_p6 = scmp.lt.s32.totalorder %s42_s16, %s42_s16 }
   0xe   :  { %p660_p5 = scmp.ne.s32.totalorder %s42_s16, %s659_s20  ;;  %p665_p7 = scmp.lt.s32.totalorder %s659_s20, %s659_s20 }
  0x10   :  { %p666_p8 = por %p665_p7, %p664_p6 }
  0x12   :  { %p667_p9 = pnand %p666_p8, %p660_p5 }
  0x14   :  { %670 = shalt.err (!%p667_p9)
}
  0x15   :  { %s687_s21 = smov 128   ;;  %s688_s22 = smov 8  }
  0x16   :  { %47 = dma.hbm_to_vmem [thread:$0]  %s846_s5, 512, %s42_s16, [#allocation6], %s687_s21, %s687_s21, %s688_s22  }
  0x17   :  { %679 = dma.done.wait [#allocation3], 128  }
  0x18   :  { %680 = vsyncadd [#allocation3], 4294967168 }
  0x19   :  { %681 = dma.done.wait [#allocation6], 512  }
  0x1a   :  { %682 = vsyncadd [#allocation6], 4294966784  ;;  %v689_v0 = vmov 0.0   ;;  %vm690_vm0 = vmmov 0   ;;  %v68_v1 = vld [vmem:[%s844_s3 + $0x18] sm:$0xff]  ;;  %v67_v2 = vld [vmem:[%s844_s3 + $0x10] sm:$0xff]  ;;  %v398_v63 = vlaneseq }
  0x1b   :  { %537 = vmatprep.subr.mxu0 %v689_v0  ;;  %545 = vmatprep.mubr.msk.f32.mxu0 %vm690_vm0, %v689_v0  ;;  %v66_v3 = vld [vmem:[%s844_s3 + $0x8] sm:$0xff]  ;;  %v65_v4 = vld [vmem:[%s844_s3] sm:$0xff]  ;;  %vm76_vm1 = vcmask 261120   ;;  %v171_v9 = vld [vmem:[#allocation5 + $0x10] sm:$0xff]  ;;  %vm405_vm2 = vcmask 130048   ;;  %vm431_vm3 = vcmask 7168  }
  0x1c   :  { %588 = vmatprep.subr.mxu1 %v689_v0  ;;  %551 = vmatprep.mubr.msk.f32.mxu1 %vm690_vm0, %v689_v0  ;;  %v62_v5 = vld [vmem:[%s841_s0] sm:$0xff]  ;;  %v170_v10 = vld [vmem:[#allocation5 + $0x8] sm:$0xff]  ;;  %v169_v11 = vld [vmem:[#allocation5] sm:$0xff]  ;;  %s691_s30 = smov [#allocation7]  }
  0x1d   :  { %538 = vmatpush3.msra.mxu0 %v68_v1  ;;  %592 = vmatpush3.msra.mxu1 %v68_v1  ;;  %v64_v6 = vld [vmem:[#allocation2] sm:$0xff]  ;;  %v275_v12 = vld [vmem:[%s848_s7 + $0x18] sm:$0xff]  ;;  %v274_v13 = vld [vmem:[%s848_s7 + $0x10] sm:$0xff] }
  0x1e   :  { %539 = vmatprep.subr.mxu0 %v689_v0  ;;  %589 = vmatprep.subr.mxu1 %v689_v0  ;;  %v172_v7 = vld [vmem:[#allocation5 + $0x18] sm:$0xff]  ;;  %v273_v27 = vld [vmem:[%s848_s7 + $0x8] sm:$0xff] }
  0x1f   :  { %540 = vmatpush3.msra.mxu0 %v67_v2  ;;  %593 = vmatpush3.msra.mxu1 %v67_v2  ;;  %v63_v8 = vld [vmem:[%s842_s1] sm:$0xff]  ;;  %v399_v2 = vshrl.u32 %v398_v63, 7 }
  0x20   :  { %541 = vmatprep.subr.mxu0 %v689_v0  ;;  %590 = vmatprep.subr.mxu1 %v689_v0  ;;  %v498_v14 = vld [vmem:[%s845_s4] ss:$0 sm:$0xff] }
  0x21   :  { %542 = vmatpush3.msra.mxu0 %v66_v3  ;;  %594 = vmatpush3.msra.mxu1 %v66_v3  ;;  %v272_v28 = vld [vmem:[%s848_s7] sm:$0xff]  ;;  %v400_v3 = vsub.s32 0, %v399_v2 }
  0x22   :  { %543 = vmatprep.subr.mxu0 %v689_v0  ;;  %591 = vmatprep.subr.mxu1 %v689_v0  ;;  %v502_v29 = vld [vmem:[%s847_s6] ss:$0 sm:$0xff] }
  0x23   :  { %544 = vmatpush3.msra.mxu0 %v65_v4  ;;  %595 = vmatpush3.msra.mxu1 %v65_v4  ;;  %v390_v42 = vld [vmem:[%s850_s9] sm:$0x1] }
  0x24   :  { %546 = vmatmul.mubr.msk.f32.vlgmr.msra.gmra.mxu0 %vm76_vm1, %v62_v5  ;;  %552 = vmatmul.mubr.msk.f32.vlgmr.msra.gmra.mxu1 %vm76_vm1, %v64_v6  ;;  %v513_v43 = vmul.f32 -1.442695, %v390_v42  ;;  %v506_v44 = vld [vmem:[%s849_s8] ss:$0 sm:$0xff] }
  0x25   :  { %548 = vmatprep.mubr.msk.f32.mxu0 %vm690_vm0, %v689_v0  ;;  %554 = vmatprep.subr.mxu1 %v689_v0 }
  0x26   :  { %555 = vmatpush3.msra.mxu1 %v172_v7  ;;  %562 = vmatprep.mubr.msk.f32.mxu1 %vm690_vm0, %v689_v0  ;;  %609 = vpow2.f32 %v513_v43 }
  0x27   :  { %556 = vmatprep.subr.mxu1 %v689_v0  ;;  %571 = vmatprep.subr.mxu0 %v689_v0 }
  0x28   :  { %549 = vmatmul.mubr.msk.f32.gmra.mxu0 %vm76_vm1, %v63_v8  ;;  %557 = vmatpush3.msra.mxu1 %v171_v9 }
  0x29   :  { %579 = vmatprep.mubr.msk.f32.mxu0 %vm690_vm0, %v689_v0  ;;  %558 = vmatprep.subr.mxu1 %v689_v0 }
  0x2a   :  { %559 = vmatpush3.msra.mxu1 %v170_v10  ;;  %572 = vmatpush3.msra.mxu0 %v275_v12 }
  0x2b   :  { %560 = vmatprep.subr.mxu1 %v689_v0  ;;  %573 = vmatprep.subr.mxu0 %v689_v0 }
  0x2c   :  { %561 = vmatpush3.msra.mxu1 %v169_v11  ;;  %574 = vmatpush3.msra.mxu0 %v274_v13 }
  0x2d   :  { %575 = vmatprep.subr.mxu0 %v689_v0 }
  0x2e   :  { %576 = vmatpush3.msra.mxu0 %v273_v27 }
  0x2f   :  { %577 = vmatprep.subr.mxu0 %v689_v0 }
  0x30   :  { %578 = vmatpush3.msra.mxu0 %v272_v28 }
  0x33   :  { %v610_v57 = vpop.eup %609 }
  0x34   :  { %v394_v58 = vadd.f32 1.0, %v610_v57 }
  0xe4   :  { %v152_v15 = vpop.f32.mrf.mxu0  ;;  %v162_v16 = vpop.f32.mrf.mxu1 }
  0xe5   :  { %v153_v17 = vadd.f32 %v498_v14, %v152_v15  ;;  %v163_v23 = vadd.f32 %v498_v14, %v162_v16 }
  0xe6   :  { %v547_v18 = vpop.f32.mrf.mxu0  ;;  %v553_v19 = vpop.f32.mrf.mxu1 }
  0xe7   :  { %v166_v20 = vmax.f32 %v153_v17, 0.0  ;;  %v168_v26 = vmax.f32 %v163_v23, 0.0 }
  0xe8   :  { %v157_v21 = vpop.f32.mrf.mxu0 }
  0xe9   :  { %v158_v22 = vadd.f32 %v498_v14, %v157_v21  ;;  %563 = vmatmul.mubr.msk.f32.vlgmr.msra.gmra.mxu1 %vm76_vm1, %v166_v20 }
  0xea   :  { %v550_v24 = vpop.f32.mrf.mxu0  ;;  %565 = vmatprep.mubr.msk.f32.mxu1 %vm690_vm0, %v689_v0 }
  0xeb   :  { %v167_v25 = vmax.f32 %v158_v22, 0.0 }
  0xed   :  { %566 = vmatmul.mubr.msk.f32.gmra.mxu1 %vm76_vm1, %v167_v25 }
  0xee   :  { %568 = vmatprep.mubr.msk.f32.mxu1 %vm690_vm0, %v689_v0 }
  0xf1   :  { %569 = vmatmul.mubr.msk.f32.gmra.mxu1 %vm76_vm1, %v168_v26 }
 0x1a9   :  { %v255_v30 = vpop.f32.mrf.mxu1 }
 0x1aa   :  { %v256_v31 = vadd.f32 %v502_v29, %v255_v30 }
 0x1ab   :  { %v564_v32 = vpop.f32.mrf.mxu1 }
 0x1ac   :  { %v269_v33 = vmax.f32 %v256_v31, 0.0 }
 0x1ad   :  { %v260_v34 = vpop.f32.mrf.mxu1 }
 0x1ae   :  { %v261_v35 = vadd.f32 %v502_v29, %v260_v34  ;;  %580 = vmatmul.mubr.msk.f32.vlgmr.msra.gmra.mxu0 %vm76_vm1, %v269_v33 }
 0x1af   :  { %v567_v36 = vpop.f32.mrf.mxu1  ;;  %582 = vmatprep.mubr.msk.f32.mxu0 %vm690_vm0, %v689_v0 }
 0x1b0   :  { %v270_v37 = vmax.f32 %v261_v35, 0.0 }
 0x1b1   :  { %v265_v38 = vpop.f32.mrf.mxu1 }
 0x1b2   :  { %v266_v39 = vadd.f32 %v502_v29, %v265_v38  ;;  %583 = vmatmul.mubr.msk.f32.gmra.mxu0 %vm76_vm1, %v270_v37 }
 0x1b3   :  { %v570_v40 = vpop.f32.mrf.mxu1  ;;  %585 = vmatprep.mubr.msk.f32.mxu0 %vm690_vm0, %v689_v0 }
 0x1b4   :  { %v271_v41 = vmax.f32 %v266_v39, 0.0 }
 0x1b6   :  { %586 = vmatmul.mubr.msk.f32.gmra.mxu0 %vm76_vm1, %v271_v41 }
 0x26e   :  { %v358_v45 = vpop.f32.mrf.mxu0 }
 0x26f   :  { %v359_v46 = vadd.f32 %v506_v44, %v358_v45 }
 0x270   :  { %v581_v47 = vpop.f32.mrf.mxu0 }
 0x271   :  { %v510_v48 = vmul.f32 -1.442695, %v359_v46 }
 0x272   :  { %v363_v49 = vpop.f32.mrf.mxu0 }
 0x273   :  { %v364_v50 = vadd.f32 %v506_v44, %v363_v49  ;;  %611 = vpow2.f32 %v510_v48 }
 0x274   :  { %v584_v51 = vpop.f32.mrf.mxu0 }
 0x275   :  { %v511_v52 = vmul.f32 -1.442695, %v364_v50 }
 0x276   :  { %v368_v53 = vpop.f32.mrf.mxu0 }
 0x277   :  { %613 = vpow2.f32 %v511_v52  ;;  %v369_v54 = vadd.f32 %v506_v44, %v368_v53 }
 0x278   :  { %v587_v55 = vpop.f32.mrf.mxu0 }
 0x279   :  { %v512_v56 = vmul.f32 -1.442695, %v369_v54 }
 0x27b   :  { %615 = vpow2.f32 %v512_v56 }
 0x27c   :  { %617 = vrcp.f32 %v394_v58 }
 0x280   :  { %v612_v59 = vpop.eup %611 }
 0x281   :  { %v381_v61 = vadd.f32 1.0, %v612_v59 }
 0x284   :  { %v614_v60 = vpop.eup %613 }
 0x285   :  { %v382_v62 = vadd.f32 1.0, %v614_v60 }
 0x287   :  { %619 = vrcp.f32 %v382_v62 }
 0x288   :  { %v616_v0 = vpop.eup %615  ;;  %621 = vrcp.f32 %v381_v61 }
 0x289   :  { %v383_v1 = vadd.f32 1.0, %v616_v0  ;;  %v618_v4 = vpop.eup %617 }
 0x28a   :  { %v401_v5 = vrot.slane %v618_v4, %v400_v3 }
 0x28b   :  { %623 = vrcp.f32 %v383_v1 }
 0x294   :  { %v620_v6 = vpop.eup %619 }
 0x295   :  { %v403_v7 = vmul.f32 %v620_v6, %v401_v5  ;;  %v622_v8 = vpop.eup %621 }
 0x297   :  { %v409_v9 = vsel %vm405_vm2, %v403_v7, 0.0  ;;  %v404_v10 = vmul.f32 %v622_v8, %v403_v7 }
 0x298   :  { %v624_v11 = vpop.eup %623  ;;  %410 = vadd.xlane.f32.xlu1 %v409_v9 }
 0x299   :  { %v406_v12 = vsel %vm405_vm2, %v404_v10, 0.0  ;;  %v412_v13 = vmul.f32 %v624_v11, %v403_v7 }
 0x29a   :  { %407 = vadd.xlane.f32.xlu0 %v406_v12 }
 0x29b   :  { %v413_v14 = vsel %vm405_vm2, %v412_v13, 0.0 }
 0x29e   :  { %414 = vadd.xlane.f32.xlu0 %v413_v14 }
 0x321   :  { %v411_v15 = vpop.xlane.xlu1 %410 }
 0x322   :  { %625 = vrcp.f32 %v411_v15 }
 0x323   :  { %v408_v16 = vpop.xlane.xlu0 %407 }
 0x324   :  { %v514_v17 = vadd.f32 -0.1, %v408_v16 }
 0x327   :  { %v415_v18 = vpop.xlane.xlu0 %414 }
 0x328   :  { %v417_v19 = vsub.f32 %v514_v17, %v415_v18 }
 0x32a   :  { %v420_v20 = vand.u32 2147483647, %v417_v19  ;;  %v418_v30 = vsub.f32 0.0, %v417_v19 }
 0x32c   :  { %v421_v21 = vsub.f32 0.0, %v420_v20  ;;  %v419_v32 = vmax.f32 %v418_v30, 0.0 }
 0x32e   :  { %v422_v22 = vmul.f32 1.442695, %v421_v21 }
 0x32f   :  { %v626_v23 = vpop.eup %625 }
 0x330   :  { %v429_v24 = vmul.f32 %v626_v23, %v408_v16  ;;  %627 = vpow2.f32 %v422_v22  ;;  %v430_v33 = vmul.f32 %v626_v23, %v415_v18 }
 0x332   :  { %v515_v25 = vadd.f32 -1.0, %v429_v24  ;;  %v460_v36 = vmul.f32 %v430_v33, %v430_v33 }
 0x334   :  { %v446_v26 = vmul.f32 %v515_v25, %v515_v25  ;;  %v461_v38 = vsel %vm431_vm3, %v460_v36, 0.0 }
 0x336   :  { %v447_v27 = vsel %vm431_vm3, %v446_v26, 0.0 }
 0x337   :  { %448 = vadd.xlane.f32.xlu0 %v447_v27 }
 0x33d   :  { %v628_v28 = vpop.eup %627 }
 0x33e   :  { %v424_v29 = vadd.f32 1.0, %v628_v28 }
 0x340   :  { %629 = vlog2.f32 %v424_v29 }
 0x34d   :  { %v630_v31 = vpop.eup %629 }
 0x34e   :  { %v426_v34 = vmul.f32 0.6931472, %v630_v31 }
 0x350   :  { %v427_v35 = vadd.f32 %v426_v34, %v419_v32 }
 0x352   :  { %v432_v37 = vsel %vm431_vm3, %v427_v35, 0.0 }
 0x353   :  { %433 = vadd.xlane.f32.xlu1 %v432_v37 }
 0x357   :  { %462 = vadd.xlane.f32.xlu1 %v461_v38 }
 0x3c0   :  { %v449_v39 = vpop.xlane.xlu0 %448 }
 0x3c1   :  { %v450_v40 = vrot.slane %v449_v39, 4 }
 0x3c3   :  { %v451_v41 = vadd.f32 %v450_v40, %v449_v39 }
 0x3c5   :  { %v452_v42 = vrot.slane %v451_v41, 2 }
 0x3c7   :  { %v453_v46 = vadd.f32 %v452_v42, %v451_v41 }
 0x3c9   :  { %v454_v52 = vrot.slane %v453_v46, 1 }
 0x3cb   :  { %v455_v57 = vadd.f32 %v454_v52, %v453_v46 }
 0x3dc   :  { %v434_v43 = vpop.xlane.xlu1 %433 }
 0x3dd   :  { %v435_v44 = vrot.slane %v434_v43, 4 }
 0x3df   :  { %v436_v45 = vadd.f32 %v435_v44, %v434_v43 }
 0x3e0   :  { %v463_v47 = vpop.xlane.xlu1 %462 }
 0x3e1   :  { %v437_v48 = vrot.slane %v436_v45, 2  ;;  %v464_v49 = vrot.slane %v463_v47, 4 }
 0x3e3   :  { %v465_v50 = vadd.f32 %v464_v49, %v463_v47  ;;  %v438_v51 = vadd.f32 %v437_v48, %v436_v45 }
 0x3e5   :  { %v466_v53 = vrot.slane %v465_v50, 2  ;;  %v439_v54 = vrot.slane %v438_v51, 1 }
 0x3e7   :  { %v467_v55 = vadd.f32 %v466_v53, %v465_v50  ;;  %v440_v56 = vadd.f32 %v439_v54, %v438_v51 }
 0x3e9   :  { %596 = vpush %v440_v56  ;;  %v468_v58 = vrot.slane %v467_v55, 1 }
 0x3ea   :  { %598 = vpush %v455_v57 }
 0x3eb   :  { %v469_v59 = vadd.f32 %v468_v58, %v467_v55 }
 0x3ed   :  { %600 = vpush %v469_v59 }
 0x41a   :  { %s597_s8 = spop %596 }
 0x41b   :  { %s444_s9 = smul.f32 0.125, %s597_s8  ;;  %s599_s2 = spop %598 }
 0x41c   :  { %s459_s25 = smul.f32 0.125, %s599_s2 }
 0x41d   :  { %480 = sst [smem:[#allocation7 + $0x1]] %s444_s9 }
 0x41e   :  { %s601_s5 = spop %600 }
 0x41f   :  { %s473_s26 = smul.f32 0.125, %s601_s5 }
 0x421   :  { %s474_s27 = sadd.f32 %s473_s26, %s459_s25 }
 0x423   :  { %s475_s28 = smul.f32 0.5, %s474_s27  ;;  %482 = sst [smem:[#allocation7 + $0x2]] %s474_s27 }
 0x425   :  { %s476_s29 = sadd.f32 %s475_s28, %s444_s9 }
 0x427   :  { %478 = sst [smem:[#allocation7]] %s476_s29 }
 0x428   :  { %490 = dma.smem_to_hbm %s691_s30, 16, %s851_s10, [#allocation4]  }
 0x429   :  { %683 = dma.done.wait [#allocation4], 16  }
 0x42a   :  { %684 = vsyncadd [#allocation4], 4294967280 }
 0x42b   :  { %494 = sfence }
 0x42c   :  { %495 = vsyncpa [#allocation3], 1 }
 0x42d   :  { %496 = vsyncpa [#allocation6], 1 }
 0x42e   :  { %497 = vsyncpa [#allocation4], 1 }

</bundles_post_ra>
